<compile_context>
chip_gen: v6e
topology: v6e:2x2x1
jax: 0.10.0
libtpu: 0.0.40
codegen_flags: <defaults>
</compile_context>

<pallas_src>
import functools

import jax
import jax.numpy as jnp
from jax.experimental import pallas as pl
from jax.experimental.pallas import tpu as pltpu


# ----------------------------------------------------------------------------
# Pallas kernel: one grid step == one batch tile, ALL tasks / groups fused
# ----------------------------------------------------------------------------
def _mt_cnn_kernel(kernel_sizes, kernel_nums, n_tasks, emb_ref, *refs):
    n_groups = len(kernel_sizes)
    w_refs = refs[:n_groups]                       # packed conv weights per group
    cb_ref, fcw_ref, fcb_ref, o_ref = refs[n_groups:]

    emb = emb_ref[...]                             # (TB, S, D)
    TB, S, D = emb.shape

    pooled = []
    for g in range(n_groups):
        ks = kernel_sizes[g]
        num = kernel_nums[g]
        L = S - ks + 1
        # im2col: concat the ks shifted slices along the feature dim -> K = ks*D
        x_unf = jnp.concatenate(
            [emb[:, dt:dt + L, :] for dt in range(ks)], axis=-1)   # (TB, L, ks*D)
        w = w_refs[g][...]                                          # (ks*D, n_tasks*num)
        y = jax.lax.dot_general(
            x_unf, w,
            dimension_numbers=(((2,), (0,)), ((), ())),
            preferred_element_type=jnp.float32)                     # (TB, L, n_tasks*num)
        # max-pool over time BEFORE bias/relu (exact reorder)
        pooled.append(jnp.max(y, axis=1))                           # (TB, n_tasks*num)

    feat = jnp.concatenate(pooled, axis=-1)                         # (TB, F)
    feat = jnp.maximum(feat + cb_ref[...], 0.0)                     # bias + ReLU on pooled

    w_fc = fcw_ref[...]                                             # (F, C_pad) block-diag
    out = jnp.dot(feat.astype(w_fc.dtype), w_fc,
                  preferred_element_type=jnp.float32) + fcb_ref[...]
    o_ref[...] = out.astype(o_ref.dtype)                            # (TB, C_pad) lane-dense


# ----------------------------------------------------------------------------
# Wrapper
# ----------------------------------------------------------------------------
def _pick_batch_tile(B, max_tile=256):
    """Largest batch tile that divides B; multiple of 8 when tiling is needed."""
    if B <= max_tile:
        return B
    for tb in range(max_tile, 7, -1):
        if tb % 8 == 0 and B % tb == 0:
            return tb
    return B


def mt_cnn_forward(review, params, *, kernel_sizes, kernel_nums, n_class,
                   compute_dtype=jnp.float32, batch_tile=256):
    # Embedding lookup (gather) is glue, kept in plain JAX.
    # TODO(synk): move embedding gather into the kernel via manual DMA gather if needed.
    emb = jnp.take(params["embedding"], review, axis=0).astype(compute_dtype)  # (B, S, D)
    B, S, D = emb.shape
    n_tasks = params["fc_w"].shape[0]
    ksum = sum(kernel_nums)
    F = n_tasks * ksum                              # fused feature width
    C_out = n_tasks * n_class                       # compact task-major output cols
    C_pad = max(128, ((C_out + 127) // 128) * 128)  # lane-dense output width

    # ---- host-side operand packing (layout plumbing, not compute) ----------
    # Per group: (n_tasks, ks, D, num) -> (ks*D, n_tasks*num), rows dt-major.
    conv_ws = []
    conv_bs = []
    for g, (ks, num) in enumerate(zip(kernel_sizes, kernel_nums)):
        w = jnp.transpose(params["conv_w"][g], (1, 2, 0, 3))        # (ks, D, n_tasks, num)
        conv_ws.append(w.reshape(ks * D, n_tasks * num).astype(compute_dtype))
        conv_bs.append(params["conv_b"][g].reshape(1, n_tasks * num))
    conv_bias = jnp.concatenate(conv_bs, axis=-1).astype(jnp.float32)  # (1, F)

    # Block-diagonal FC: feat columns are (group, task, channel)-ordered; the
    # big matrix routes each task's features to that task's class columns.
    fc_w_big = jnp.zeros((F, C_pad), jnp.float32)
    fc_b_big = jnp.zeros((1, C_pad), jnp.float32)
    row = 0
    for g, num in enumerate(kernel_nums):
        off = sum(kernel_nums[:g])
        for j in range(n_tasks):
            fc_w_big = fc_w_big.at[row:row + num,
                                   j * n_class:(j + 1) * n_class].set(
                params["fc_w"][j, off:off + num, :])
            row += num
    for j in range(n_tasks):
        fc_b_big = fc_b_big.at[0, j * n_class:(j + 1) * n_class].set(params["fc_b"][j])
    fc_w_big = fc_w_big.astype(compute_dtype)

    # ---- pallas_call ---------------------------------------------------------
    TB = _pick_batch_tile(B, batch_tile)
    grid = (B // TB,)

    in_specs = [pl.BlockSpec((TB, S, D), lambda i: (i, 0, 0))]
    args = [emb]
    for w in conv_ws:
        in_specs.append(pl.BlockSpec(w.shape, lambda i: (0, 0)))
        args.append(w)
    in_specs += [
        pl.BlockSpec((1, F), lambda i: (0, 0)),
        pl.BlockSpec((F, C_pad), lambda i: (0, 0)),
        pl.BlockSpec((1, C_pad), lambda i: (0, 0)),
    ]
    args += [conv_bias, fc_w_big, fc_b_big]

    out_spec = pl.BlockSpec((TB, C_pad), lambda i: (i, 0))

    kernel = functools.partial(
        _mt_cnn_kernel, tuple(kernel_sizes), tuple(kernel_nums), n_tasks)
    out = pl.pallas_call(
        kernel,
        out_shape=jax.ShapeDtypeStruct((B, C_pad), jnp.float32),
        grid=grid,
        in_specs=in_specs,
        out_specs=out_spec,
        compiler_params=pltpu.CompilerParams(
            dimension_semantics=("parallel",)),
    )(*args)

    # Already in task-major (B, n_tasks*n_class) layout -> slice + reshape only,
    # no transpose launch.
    return out[:, :C_out].reshape(B, n_tasks, n_class)


# ----------------------------------------------------------------------------
# Deterministic parameter init (shapes follow modelCNN.__init__)
# ----------------------------------------------------------------------------
def init_params(key, *, n_tasks, n_class, vocab_size, emb_dim, kernel_sizes, kernel_nums):
    ksum = sum(kernel_nums)
    params = {}
    key, k_emb = jax.random.split(key)
    params["embedding"] = jax.random.uniform(
        k_emb, (vocab_size, emb_dim), jnp.float32, -1.0, 1.0)

    conv_w, conv_b = [], []
    for ks, num in zip(kernel_sizes, kernel_nums):
        key, kw, kb = jax.random.split(key, 3)
        bound = 1.0 / float(ks * emb_dim) ** 0.5
        conv_w.append(jax.random.uniform(
            kw, (n_tasks, ks, emb_dim, num), jnp.float32, -bound, bound))
        conv_b.append(jax.random.uniform(
            kb, (n_tasks, num), jnp.float32, -bound, bound))
    params["conv_w"] = conv_w
    params["conv_b"] = conv_b

    key, kw, kb = jax.random.split(key, 3)
    bound = 1.0 / float(ksum) ** 0.5
    params["fc_w"] = jax.random.uniform(
        kw, (n_tasks, ksum, n_class), jnp.float32, -bound, bound)
    params["fc_b"] = jax.random.uniform(
        kb, (n_tasks, n_class), jnp.float32, -bound, bound)
    return params


# ----------------------------------------------------------------------------
# Pure-JAX reference for correctness check (mirrors torch module)
# ----------------------------------------------------------------------------
def reference_forward(review, params, *, kernel_sizes, kernel_nums, n_class):
    emb = jnp.take(params["embedding"], review, axis=0)
    B, S, _ = emb.shape
    n_tasks = params["fc_w"].shape[0]
    outs = []
    for j in range(n_tasks):
        feats = []
        for g, ks in enumerate(kernel_sizes):
            w = params["conv_w"][g][j]          # (ks, D, num)
            b = params["conv_b"][g][j]          # (num,)
            L = S - ks + 1
            acc = jnp.zeros((B, L, kernel_nums[g]), jnp.float32)
            for dt in range(ks):
                acc = acc + jnp.einsum("bld,dn->bln", emb[:, dt:dt + L, :], w[dt])
            acc = jnp.maximum(acc + b[None, None, :], 0.0)
            feats.append(acc.max(axis=1))
        feat = jnp.concatenate(feats, axis=-1)
        outs.append(feat @ params["fc_w"][j] + params["fc_b"][j])
    out = jnp.stack(outs, axis=0)               # (n_tasks, B, n_class)
    return jnp.transpose(out, (1, 0, 2))


if __name__ == "__main__":
    # Small shapes consistent with the module's forward.
    n_tasks, n_class = 3, 5
    vocab_size, emb_dim = 50, 32
    kernel_sizes = (3, 4, 5)     # kernel_size  = "3,4,5"
    kernel_nums = (8, 8, 8)      # kernel_nums = "8,8,8"  -> ksum = 24
    batch, seq_len = 2, 16

    key = jax.random.PRNGKey(0)
    k_params, k_data = jax.random.split(key)
    params = init_params(
        k_params, n_tasks=n_tasks, n_class=n_class, vocab_size=vocab_size,
        emb_dim=emb_dim, kernel_sizes=kernel_sizes, kernel_nums=kernel_nums)
    review = jax.random.randint(k_data, (batch, seq_len), 0, vocab_size, dtype=jnp.int32)

    # NOTE: on v6e/v7x, pass compute_dtype=jnp.bfloat16 for bandwidth at
    # production sizes (loosen tolerance to ~1e-2); f32 here for a tight check.
    out = mt_cnn_forward(
        review, params, kernel_sizes=kernel_sizes,
        kernel_nums=kernel_nums, n_class=n_class)
    out = jax.block_until_ready(out)

    ref = reference_forward(
        review, params, kernel_sizes=kernel_sizes,
        kernel_nums=kernel_nums, n_class=n_class)

    assert out.shape == (batch, n_tasks, n_class), out.shape
    assert jnp.allclose(out, ref, atol=1e-3, rtol=1e-3), "mismatch vs reference"
    print("KERNEL_OK")
</pallas_src>

<mosaic_0001>
module attributes {stable_mosaic.version = 11 : i64} {
  func.func @_mt_cnn_kernel(%arg0: i32, %arg1: memref<2x16x32xf32, #tpu.memory_space<vmem>>, %arg2: memref<96x24xf32, #tpu.memory_space<vmem>>, %arg3: memref<128x24xf32, #tpu.memory_space<vmem>>, %arg4: memref<160x24xf32, #tpu.memory_space<vmem>>, %arg5: memref<1x72xf32, #tpu.memory_space<vmem>>, %arg6: memref<72x128xf32, #tpu.memory_space<vmem>>, %arg7: memref<1x128xf32, #tpu.memory_space<vmem>>, %arg8: memref<2x128xf32, #tpu.memory_space<vmem>>) attributes {dimension_semantics = [#tpu.dimension_semantics<parallel>], iteration_bounds = array<i64: 1>, scalar_prefetch = 0 : i64, scratch_operands = 0 : i64, tpu.core_type = #tpu.core_type<tc>, window_params = [{transform_indices = @transform_0, window_bounds = array<i64: 2, 16, 32>}, {pipeline_mode = #tpu.pipeline_mode<synchronous>, transform_indices = @transform_1, window_bounds = array<i64: 96, 24>}, {pipeline_mode = #tpu.pipeline_mode<synchronous>, transform_indices = @transform_2, window_bounds = array<i64: 128, 24>}, {pipeline_mode = #tpu.pipeline_mode<synchronous>, transform_indices = @transform_3, window_bounds = array<i64: 160, 24>}, {pipeline_mode = #tpu.pipeline_mode<synchronous>, transform_indices = @transform_4, window_bounds = array<i64: 1, 72>}, {pipeline_mode = #tpu.pipeline_mode<synchronous>, transform_indices = @transform_5, window_bounds = array<i64: 72, 128>}, {pipeline_mode = #tpu.pipeline_mode<synchronous>, transform_indices = @transform_6, window_bounds = array<i64: 1, 128>}, {transform_indices = @transform_7, window_bounds = array<i64: 2, 128>}]} {
    %c0 = arith.constant 0 : index
    %c0_0 = arith.constant 0 : index
    %c0_1 = arith.constant 0 : index
    %0 = vector.load %arg1[%c0, %c0_0, %c0_1] : memref<2x16x32xf32, #tpu.memory_space<vmem>>, vector<2x16x32xf32>
    %1 = vector.extract_strided_slice %0 {offsets = [0, 0, 0], sizes = [2, 14, 32], strides = [1, 1, 1]} : vector<2x16x32xf32> to vector<2x14x32xf32>
    %2 = vector.extract_strided_slice %0 {offsets = [0, 1, 0], sizes = [2, 14, 32], strides = [1, 1, 1]} : vector<2x16x32xf32> to vector<2x14x32xf32>
    %3 = vector.extract_strided_slice %0 {offsets = [0, 2, 0], sizes = [2, 14, 32], strides = [1, 1, 1]} : vector<2x16x32xf32> to vector<2x14x32xf32>
    %4 = tpu.concatenate %1, %2, %3 in 2 : vector<2x14x32xf32>, vector<2x14x32xf32>, vector<2x14x32xf32> -> vector<2x14x96xf32>
    %c0_2 = arith.constant 0 : index
    %c0_3 = arith.constant 0 : index
    %5 = vector.load %arg2[%c0_2, %c0_3] : memref<96x24xf32, #tpu.memory_space<vmem>>, vector<96x24xf32>
    %cst = arith.constant dense<0.000000e+00> : vector<2x14x24xf32>
    %6 = tpu.matmul %4, %5, %cst {dimension_numbers = #tpu.dot_dimension_numbers<[2], [0], [0, 1], [1], [0, 0, 0, 1, 1, 1], [], []>} : vector<2x14x96xf32>, vector<96x24xf32>, vector<2x14x24xf32> -> vector<2x14x24xf32>
    %cst_4 = arith.constant dense<0xFF800000> : vector<2x24xf32>
    %7 = vector.multi_reduction <maximumf>, %6, %cst_4 [1] : vector<2x14x24xf32> to vector<2x24xf32>
    %8 = vector.extract_strided_slice %0 {offsets = [0, 0, 0], sizes = [2, 13, 32], strides = [1, 1, 1]} : vector<2x16x32xf32> to vector<2x13x32xf32>
    %9 = vector.extract_strided_slice %0 {offsets = [0, 1, 0], sizes = [2, 13, 32], strides = [1, 1, 1]} : vector<2x16x32xf32> to vector<2x13x32xf32>
    %10 = vector.extract_strided_slice %0 {offsets = [0, 2, 0], sizes = [2, 13, 32], strides = [1, 1, 1]} : vector<2x16x32xf32> to vector<2x13x32xf32>
    %11 = vector.extract_strided_slice %0 {offsets = [0, 3, 0], sizes = [2, 13, 32], strides = [1, 1, 1]} : vector<2x16x32xf32> to vector<2x13x32xf32>
    %12 = tpu.concatenate %8, %9, %10, %11 in 2 : vector<2x13x32xf32>, vector<2x13x32xf32>, vector<2x13x32xf32>, vector<2x13x32xf32> -> vector<2x13x128xf32>
    %c0_5 = arith.constant 0 : index
    %c0_6 = arith.constant 0 : index
    %13 = vector.load %arg3[%c0_5, %c0_6] : memref<128x24xf32, #tpu.memory_space<vmem>>, vector<128x24xf32>
    %cst_7 = arith.constant dense<0.000000e+00> : vector<2x13x24xf32>
    %14 = tpu.matmul %12, %13, %cst_7 {dimension_numbers = #tpu.dot_dimension_numbers<[2], [0], [0, 1], [1], [0, 0, 0, 1, 1, 1], [], []>} : vector<2x13x128xf32>, vector<128x24xf32>, vector<2x13x24xf32> -> vector<2x13x24xf32>
    %cst_8 = arith.constant dense<0xFF800000> : vector<2x24xf32>
    %15 = vector.multi_reduction <maximumf>, %14, %cst_8 [1] : vector<2x13x24xf32> to vector<2x24xf32>
    %16 = vector.extract_strided_slice %0 {offsets = [0, 0, 0], sizes = [2, 12, 32], strides = [1, 1, 1]} : vector<2x16x32xf32> to vector<2x12x32xf32>
    %17 = vector.extract_strided_slice %0 {offsets = [0, 1, 0], sizes = [2, 12, 32], strides = [1, 1, 1]} : vector<2x16x32xf32> to vector<2x12x32xf32>
    %18 = vector.extract_strided_slice %0 {offsets = [0, 2, 0], sizes = [2, 12, 32], strides = [1, 1, 1]} : vector<2x16x32xf32> to vector<2x12x32xf32>
    %19 = vector.extract_strided_slice %0 {offsets = [0, 3, 0], sizes = [2, 12, 32], strides = [1, 1, 1]} : vector<2x16x32xf32> to vector<2x12x32xf32>
    %20 = vector.extract_strided_slice %0 {offsets = [0, 4, 0], sizes = [2, 12, 32], strides = [1, 1, 1]} : vector<2x16x32xf32> to vector<2x12x32xf32>
    %21 = tpu.concatenate %16, %17, %18, %19, %20 in 2 : vector<2x12x32xf32>, vector<2x12x32xf32>, vector<2x12x32xf32>, vector<2x12x32xf32>, vector<2x12x32xf32> -> vector<2x12x160xf32>
    %c0_9 = arith.constant 0 : index
    %c0_10 = arith.constant 0 : index
    %22 = vector.load %arg4[%c0_9, %c0_10] : memref<160x24xf32, #tpu.memory_space<vmem>>, vector<160x24xf32>
    %cst_11 = arith.constant dense<0.000000e+00> : vector<2x12x24xf32>
    %23 = tpu.matmul %21, %22, %cst_11 {dimension_numbers = #tpu.dot_dimension_numbers<[2], [0], [0, 1], [1], [0, 0, 0, 1, 1, 1], [], []>} : vector<2x12x160xf32>, vector<160x24xf32>, vector<2x12x24xf32> -> vector<2x12x24xf32>
    %cst_12 = arith.constant dense<0xFF800000> : vector<2x24xf32>
    %24 = vector.multi_reduction <maximumf>, %23, %cst_12 [1] : vector<2x12x24xf32> to vector<2x24xf32>
    %25 = tpu.concatenate %7, %15, %24 in 1 : vector<2x24xf32>, vector<2x24xf32>, vector<2x24xf32> -> vector<2x72xf32>
    %c0_13 = arith.constant 0 : index
    %c0_14 = arith.constant 0 : index
    %26 = vector.load %arg5[%c0_13, %c0_14] : memref<1x72xf32, #tpu.memory_space<vmem>>, vector<1x72xf32>
    %27 = vector.broadcast %26 : vector<1x72xf32> to vector<2x72xf32>
    %28 = arith.addf %25, %27 : vector<2x72xf32>
    %cst_15 = arith.constant 0.000000e+00 : f32
    %29 = vector.broadcast %cst_15 : f32 to vector<2x72xf32>
    %30 = arith.maximumf %28, %29 : vector<2x72xf32>
    %c0_16 = arith.constant 0 : index
    %c0_17 = arith.constant 0 : index
    %31 = vector.load %arg6[%c0_16, %c0_17] : memref<72x128xf32, #tpu.memory_space<vmem>>, vector<72x128xf32>
    %cst_18 = arith.constant dense<0.000000e+00> : vector<2x128xf32>
    %32 = tpu.matmul %30, %31, %cst_18 {dimension_numbers = #tpu.dot_dimension_numbers<[1], [0], [0], [1], [0, 0, 1, 1], [], []>} : vector<2x72xf32>, vector<72x128xf32>, vector<2x128xf32> -> vector<2x128xf32>
    %c0_19 = arith.constant 0 : index
    %c0_20 = arith.constant 0 : index
    %33 = vector.load %arg7[%c0_19, %c0_20] : memref<1x128xf32, #tpu.memory_space<vmem>>, vector<1x128xf32>
    %34 = vector.broadcast %33 : vector<1x128xf32> to vector<2x128xf32>
    %35 = arith.addf %32, %34 : vector<2x128xf32>
    %c0_21 = arith.constant 0 : index
    %c0_22 = arith.constant 0 : index
    %36 = vector.load %arg8[%c0_21, %c0_22] : memref<2x128xf32, #tpu.memory_space<vmem>>, vector<2x128xf32>
    tpu.vector_store %arg8[%c0_21, %c0_22], %35 {strides = array<i32>} : memref<2x128xf32, #tpu.memory_space<vmem>>, vector<2x128xf32>,
    return
  }
  func.func @transform_0(%arg0: i32) -> (i32, i32, i32) {
    %c0_i32 = arith.constant 0 : i32
    %c0_i32_0 = arith.constant 0 : i32
    %c0_i32_1 = arith.constant 0 : i32
    return %arg0, %c0_i32, %c0_i32_0 : i32, i32, i32
  }
  func.func @transform_1(%arg0: i32) -> (i32, i32) {
    %c0_i32 = arith.constant 0 : i32
    %c0_i32_0 = arith.constant 0 : i32
    %c0_i32_1 = arith.constant 0 : i32
    return %c0_i32, %c0_i32_0 : i32, i32
  }
  func.func @transform_2(%arg0: i32) -> (i32, i32) {
    %c0_i32 = arith.constant 0 : i32
    %c0_i32_0 = arith.constant 0 : i32
    %c0_i32_1 = arith.constant 0 : i32
    return %c0_i32, %c0_i32_0 : i32, i32
  }
  func.func @transform_3(%arg0: i32) -> (i32, i32) {
    %c0_i32 = arith.constant 0 : i32
    %c0_i32_0 = arith.constant 0 : i32
    %c0_i32_1 = arith.constant 0 : i32
    return %c0_i32, %c0_i32_0 : i32, i32
  }
  func.func @transform_4(%arg0: i32) -> (i32, i32) {
    %c0_i32 = arith.constant 0 : i32
    %c0_i32_0 = arith.constant 0 : i32
    %c0_i32_1 = arith.constant 0 : i32
    return %c0_i32, %c0_i32_0 : i32, i32
  }
  func.func @transform_5(%arg0: i32) -> (i32, i32) {
    %c0_i32 = arith.constant 0 : i32
    %c0_i32_0 = arith.constant 0 : i32
    %c0_i32_1 = arith.constant 0 : i32
    return %c0_i32, %c0_i32_0 : i32, i32
  }
  func.func @transform_6(%arg0: i32) -> (i32, i32) {
    %c0_i32 = arith.constant 0 : i32
    %c0_i32_0 = arith.constant 0 : i32
    %c0_i32_1 = arith.constant 0 : i32
    return %c0_i32, %c0_i32_0 : i32, i32
  }
  func.func @transform_7(%arg0: i32) -> (i32, i32) {
    %c0_i32 = arith.constant 0 : i32
    %c0_i32_0 = arith.constant 0 : i32
    return %arg0, %c0_i32 : i32, i32
  }
}

</mosaic_0001>

<bundles_post_ra>
// kernel: tpu_custom_call.1
= control target key start
LH: loop header
LB: loop body
LE: loop exit
PB: predicated region body
PF: predicated region fallthrough
CT: control target
= control target key end

     0   :  { %vm35_vm0 = vcmask 1046528   ;;  %vm54_vm1 = vcmask 1045504   ;;  %s1792_s11 = smov 32   ;;  %s1793_s21 = smov 64   ;;  %vm471_vm2 = vcmask 1044480   ;;  %s2328_s0 = inlined_call_operand.vmem [shape: f32[2,16,32], index: 0, kind: input, shape index: {}]   ;;  %s2329_s1 = inlined_call_operand.vmem [shape: f32[96,24], index: 1, kind: input, shape index: {}]   ;;  %s2330_s2 = inlined_call_operand.vmem [shape: f32[128,24], index: 2, kind: input, shape index: {}]   ;;  %s2331_s3 = inlined_call_operand.vmem [shape: f32[160,24], index: 3, kind: input, shape index: {}]   ;;  %s2332_s4 = inlined_call_operand.vmem [shape: f32[1,72], index: 4, kind: input, shape index: {}]   ;;  %s2333_s5 = inlined_call_operand.vmem [shape: f32[72,128], index: 5, kind: input, shape index: {}]   ;;  %s2334_s6 = inlined_call_operand.vmem [shape: f32[1,128], index: 6, kind: input, shape index: {}]   ;;  %s2335_s7 = inlined_call_operand.hbm [shape: f32[2,128], index: 7, kind: output, shape index: {}]  }
   0x1   :  { %v1845_v0 = vld [vmem:[%s2328_s0 + $0x8] sm:$0xff]  ;;  %v1850_v1 = vld [vmem:[%s2328_s0] sm:$0xff]  ;;  %v1859_v6 = vld [vmem:[%s2328_s0 + $0x10] sm:$0xff] }
   0x2   :  { %v37_v2 = vrot.slane %v1845_v0, 1  ;;  %v36_v3 = vrot.slane %v1850_v1, 1  ;;  %v56_v4 = vrot.slane %v1845_v0, 2  ;;  %v55_v5 = vrot.slane %v1850_v1, 2  ;;  %v1864_v7 = vld [vmem:[%s2328_s0 + $0x18] sm:$0xff]  ;;  %v93_v10 = vld [vmem:[%s2329_s1 + $0x50] sm:$0xff] }
   0x3   :  { %v94_v8 = vld [vmem:[%s2329_s1 + $0x58] sm:$0xff]  ;;  %v58_v11 = vrot.slane %v1859_v6, 2  ;;  %v59_v12 = vrot.slane %v1864_v7, 2  ;;  %v92_v13 = vld [vmem:[%s2329_s1 + $0x48] sm:$0xff]  ;;  %v39_v16 = vrot.slane %v1859_v6, 1  ;;  %v40_v17 = vrot.slane %v1864_v7, 1 }
   0x4   :  { %44 = vrot.lane.b32.xlu1 %v37_v2, %s1792_s11  ;;  %v38_v9 = vsel %vm35_vm0, %v36_v3, %v37_v2  ;;  %1671 = vmatprep.subr.mxu0 %v94_v8  ;;  %v509_v14 = vld [vmem:[%s2330_s2 + $0x78] sm:$0xff]  ;;  %v57_v15 = vsel %vm54_vm1, %v55_v5, %v56_v4  ;;  %v91_v18 = vld [vmem:[%s2329_s1 + $0x40] sm:$0xff]  ;;  %v508_v19 = vld [vmem:[%s2330_s2 + $0x70] sm:$0xff]  ;;  %v475_v21 = vrot.slane %v1859_v6, 3  ;;  %v476_v22 = vrot.slane %v1864_v7, 3 }
   0x5   :  { %42 = vrot.lane.b32.xlu0 %v38_v9, %s1792_s11  ;;  %1672 = vmatpush3.msra.mxu0 %v94_v8  ;;  %v60_v20 = vsel %vm54_vm1, %v58_v11, %v59_v12  ;;  %v90_v23 = vld [vmem:[%s2329_s1 + $0x38] sm:$0xff]  ;;  %v41_v24 = vsel %vm35_vm0, %v39_v16, %v40_v17  ;;  %v472_v25 = vrot.slane %v1850_v1, 3  ;;  %v473_v26 = vrot.slane %v1845_v0, 3  ;;  %v89_v27 = vld [vmem:[%s2329_s1 + $0x30] sm:$0xff]  ;;  %v507_v28 = vld [vmem:[%s2330_s2 + $0x68] sm:$0xff] }
   0x6   :  { %1673 = vmatprep.subr.mxu0 %v93_v10  ;;  %1701 = vmatprep.subr.mxu1 %v509_v14 }
   0x7   :  { %1674 = vmatpush3.msra.mxu0 %v93_v10  ;;  %1702 = vmatpush3.msra.mxu1 %v509_v14 }
   0x8   :  { %63 = vrot.lane.b32.xlu1 %v56_v4, %s1793_s21  ;;  %1675 = vmatprep.subr.mxu0 %v92_v13 }
   0x9   :  { %61 = vrot.lane.b32.xlu0 %v57_v15, %s1793_s21  ;;  %1676 = vmatpush3.msra.mxu0 %v92_v13 }
   0xa   :  { %1677 = vmatprep.subr.mxu0 %v91_v18  ;;  %1703 = vmatprep.subr.mxu1 %v508_v19 }
   0xb   :  { %1678 = vmatpush3.msra.mxu0 %v91_v18  ;;  %1704 = vmatpush3.msra.mxu1 %v508_v19 }
   0xc   :  { %12 = vsyncpa [#allocation3], 0  ;;  %65 = vrot.lane.b32.xlu1 %v60_v20, %s1793_s21  ;;  %1679 = vmatprep.subr.mxu0 %v90_v23  ;;  %v477_v29 = vsel %vm471_vm2, %v475_v21, %v476_v22  ;;  %v88_v30 = vld [vmem:[%s2329_s1 + $0x28] sm:$0xff]  ;;  %v474_v31 = vsel %vm471_vm2, %v472_v25, %v473_v26  ;;  %v87_v32 = vld [vmem:[%s2329_s1 + $0x20] sm:$0xff]  ;;  %s1794_s12 = smov 96   ;;  %v1795_v44 = vmov 0.0   ;;  %v103_v53 = vlaneseq }
   0xd   :  { %46 = vrot.lane.b32.xlu0 %v41_v24, %s1792_s11  ;;  %1680 = vmatpush3.msra.mxu0 %v90_v23  ;;  %v506_v33 = vld [vmem:[%s2330_s2 + $0x60] sm:$0xff]  ;;  %v86_v34 = vld [vmem:[%s2329_s1 + $0x18] sm:$0xff]  ;;  %v85_v36 = vld [vmem:[%s2329_s1 + $0x10] sm:$0xff]  ;;  %v1796_v51 = vmov 1983009808   ;;  %vm73_vm3 = vcmask 261120  }
   0xe   :  { %1681 = vmatprep.subr.mxu0 %v89_v27  ;;  %1705 = vmatprep.subr.mxu1 %v507_v28  ;;  %v505_v35 = vld [vmem:[%s2330_s2 + $0x58] sm:$0xff]  ;;  %v504_v37 = vld [vmem:[%s2330_s2 + $0x50] sm:$0xff]  ;;  %v84_v38 = vld [vmem:[%s2329_s1 + $0x8] sm:$0xff]  ;;  %v101_v52 = vunpack.c.l.s4 %v1796_v51  ;;  %v104_v55 = vshrl.u32 %v103_v53, 7  ;;  %vm78_vm4 = vcmask 523264   ;;  %v1314_v13 = vrot.slane %v1850_v1, 4 }
   0xf   :  { %1682 = vmatpush3.msra.mxu0 %v89_v27  ;;  %1706 = vmatpush3.msra.mxu1 %v507_v28  ;;  %v503_v39 = vld [vmem:[%s2330_s2 + $0x48] sm:$0xff]  ;;  %v83_v40 = vld [vmem:[%s2329_s1] sm:$0xff]  ;;  %v501_v42 = vld [vmem:[%s2330_s2 + $0x38] sm:$0xff]  ;;  %v1797_v60 = vmov 1966171168   ;;  %v1315_v18 = vrot.slane %v1845_v0, 4 }
  0x10   :  { %482 = vrot.lane.b32.xlu1 %v477_v29, %s1794_s12  ;;  %1683 = vmatprep.subr.mxu0 %v88_v30  ;;  %v502_v41 = vld [vmem:[%s2330_s2 + $0x40] sm:$0xff]  ;;  %v500_v43 = vld [vmem:[%s2330_s2 + $0x30] sm:$0xff]  ;;  %v499_v45 = vld [vmem:[%s2330_s2 + $0x28] sm:$0xff]  ;;  %v102_v54 = vunpack.c.0.s8 %v101_v52  ;;  %v516_v61 = vunpack.c.l.s4 %v1797_v60  ;;  %vm224_vm5 = vcmask 785408   ;;  %vm1313_vm6 = vcmask 1043456   ;;  %s1799_s23 = smov 24  }
  0x11   :  { %478 = vrot.lane.b32.xlu0 %v474_v31, %s1794_s12  ;;  %1684 = vmatpush3.msra.mxu0 %v88_v30  ;;  %v498_v46 = vld [vmem:[%s2330_s2 + $0x20] sm:$0xff]  ;;  %v497_v47 = vld [vmem:[%s2330_s2 + $0x18] sm:$0xff]  ;;  %v496_v48 = vld [vmem:[%s2330_s2 + $0x10] sm:$0xff]  ;;  %v2006_v31 = vsel %vm1313_vm6, %v1314_v13, %v1315_v18  ;;  %vm453_vm7 = vcmask 193536   ;;  %vm451_vm8 = vcmask 195584   ;;  %vm1295_vm9 = vcmask 192512  }
  0x12   :  { %1685 = vmatprep.subr.mxu0 %v87_v32  ;;  %1707 = vmatprep.subr.mxu1 %v506_v33  ;;  %v495_v49 = vld [vmem:[%s2330_s2 + $0x8] sm:$0xff]  ;;  %v494_v50 = vld [vmem:[%s2330_s2] sm:$0xff]  ;;  %v1980_v59 = vsub.s32 %v102_v54, %v104_v55  ;;  %v517_v10 = vunpack.c.0.s8 %v516_v61  ;;  %vm1453_vm10 = vcmask 191488   ;;  %vm1473_vm11 = vcmask 1041409   ;;  %s1800_s24 = smov 48   ;;  %s1801_s28 = smov [#allocation2]  }
  0x13   :  { %1686 = vmatpush3.msra.mxu0 %v87_v32  ;;  %1708 = vmatpush3.msra.mxu1 %v506_v33  ;;  %vm1798_vm12 = vmmov 0   ;;  %vm1489_vm13 = vcmask 392192   ;;  %vm1516_vm14 = vcmask 588800   ;;  %s1597_s29 = sshll.u32 %s1801_s28, 4  ;;  %s1598_s29 = int_to_ptr.vmem [resolvable:$true] %s1597_s29 }
  0x14   :  { %48 = vrot.lane.b32.xlu1 %v40_v17, %s1792_s11  ;;  %1687 = vmatprep.subr.mxu0 %v86_v34  ;;  %v1995_v21 = vsub.s32 %v517_v10, %v104_v55  ;;  %p1775_p1 = scmp.lt.s32.totalorder %s1598_s29, %s1598_s29 }
  0x15   :  { %480 = vrot.lane.b32.xlu0 %v473_v26, %s1794_s12  ;;  %1709 = vmatprep.subr.mxu1 %v505_v35 }
  0x16   :  { %1688 = vmatpush3.msra.mxu0 %v86_v34  ;;  %1710 = vmatpush3.msra.mxu1 %v505_v35 }
  0x17   :  { %1689 = vmatprep.subr.mxu0 %v85_v36  ;;  %1711 = vmatprep.subr.mxu1 %v504_v37 }
  0x18   :  { %484 = vrot.lane.b32.xlu1 %v476_v22, %s1794_s12  ;;  %1690 = vmatpush3.msra.mxu0 %v85_v36 }
  0x19   :  { %67 = vrot.lane.b32.xlu0 %v59_v12, %s1793_s21  ;;  %1712 = vmatpush3.msra.mxu1 %v504_v37 }
  0x1a   :  { %1691 = vmatprep.subr.mxu0 %v84_v38  ;;  %1713 = vmatprep.subr.mxu1 %v503_v39 }
  0x1b   :  { %1692 = vmatpush3.msra.mxu0 %v84_v38  ;;  %1714 = vmatpush3.msra.mxu1 %v503_v39 }
  0x1c   :  { %1693 = vmatprep.subr.mxu0 %v83_v40  ;;  %1715 = vmatprep.subr.mxu1 %v502_v41 }
  0x1d   :  { %1694 = vmatpush3.msra.mxu0 %v83_v40  ;;  %1716 = vmatpush3.msra.mxu1 %v502_v41 }
  0x1e   :  { %1717 = vmatprep.subr.mxu1 %v501_v42  ;;  %1361 = vmatprep.subr.mxu0 %v1795_v44 }
  0x1f   :  { %1718 = vmatpush3.msra.mxu1 %v501_v42 }
  0x20   :  { %1719 = vmatprep.subr.mxu1 %v500_v43 }
  0x21   :  { %1720 = vmatpush3.msra.mxu1 %v500_v43 }
  0x22   :  { %1721 = vmatprep.subr.mxu1 %v499_v45 }
  0x23   :  { %1722 = vmatpush3.msra.mxu1 %v499_v45 }
  0x24   :  { %1723 = vmatprep.subr.mxu1 %v498_v46 }
  0x25   :  { %1724 = vmatpush3.msra.mxu1 %v498_v46 }
  0x26   :  { %1725 = vmatprep.subr.mxu1 %v497_v47 }
  0x27   :  { %1726 = vmatpush3.msra.mxu1 %v497_v47 }
  0x28   :  { %1727 = vmatprep.subr.mxu1 %v496_v48 }
  0x29   :  { %1728 = vmatpush3.msra.mxu1 %v496_v48 }
  0x2a   :  { %1729 = vmatprep.subr.mxu1 %v495_v49 }
  0x2b   :  { %1730 = vmatpush3.msra.mxu1 %v495_v49 }
  0x2c   :  { %1731 = vmatprep.subr.mxu1 %v494_v50 }
  0x2d   :  { %1732 = vmatpush3.msra.mxu1 %v494_v50 }
  0x2e   :  { %1739 = vmatprep.subr.mxu1 %v1795_v44 }
  0x76   :  { %v45_v56 = vpop.permute.xlu1 %44 }
  0x77   :  { %v43_v57 = vpop.permute.xlu0 %42  ;;  %v75_v58 = vsel %vm73_vm3, %v1845_v0, %v45_v56 }
  0x78   :  { %v74_v63 = vsel %vm73_vm3, %v1850_v1, %v43_v57 }
  0x7a   :  { %v64_v62 = vpop.permute.xlu1 %63 }
  0x7b   :  { %v80_v2 = vsel %vm78_vm4, %v75_v58, %v64_v62  ;;  %v62_v3 = vpop.permute.xlu0 %61 }
  0x7c   :  { %v123_v4 = vrot.slane %v80_v2, %v1980_v59  ;;  %v79_v5 = vsel %vm78_vm4, %v74_v63, %v62_v3  ;;  %v116_v14 = vcombine.high %v80_v2, %v80_v2 }
  0x7d   :  { %v99_v8 = vcombine.high %v79_v5, %v79_v5  ;;  %v106_v9 = vrot.slane %v79_v5, %v1980_v59 }
  0x7e   :  { %v131_v11 = vcombine.high %v123_v4, %v123_v4  ;;  %v66_v12 = vpop.permute.xlu1 %65  ;;  %v130_v27 = vrot.slane %v116_v14, %v1980_v59 }
  0x7f   :  { %v113_v15 = vrot.slane %v99_v8, %v1980_v59  ;;  %v114_v16 = vcombine.high %v106_v9, %v106_v9  ;;  %v47_v17 = vpop.permute.xlu0 %46 }
  0x80   :  { %v1991_v19 = vcombine.low %v123_v4, %v131_v11  ;;  %v76_v20 = vsel %vm73_vm3, %v1859_v6, %v47_v17 }
  0x81   :  { %v81_v22 = vsel %vm78_vm4, %v76_v20, %v66_v12  ;;  %v115_v23 = vcombine.high %v113_v15, %v113_v15  ;;  %v165_v24 = vcombine.low %v106_v9, %v114_v16 }
  0x82   :  { %v483_v1 = vpop.permute.xlu1 %482  ;;  %v132_v25 = vcombine.high %v81_v22, %v81_v22  ;;  %v139_v26 = vrot.slane %v81_v22, %v1980_v59  ;;  %v190_v32 = vrot.slane %v1991_v19, %v1980_v59 }
  0x83   :  { %v2001_v28 = vsel %vm224_vm5, %v81_v22, %v483_v1  ;;  %v479_v29 = vpop.permute.xlu0 %478  ;;  %v166_v30 = vcombine.low %v113_v15, %v115_v23  ;;  %v173_v38 = vrot.slane %v165_v24, %v1980_v59  ;;  %v1335_v23 = vld [vmem:[%s2331_s3 + $0x78] sm:$0xff] }
  0x84   :  { %v146_v33 = vrot.slane %v132_v25, %v1980_v59  ;;  %v147_v34 = vcombine.high %v139_v26, %v139_v26  ;;  %v602_v35 = vcombine.high %v2001_v28, %v2001_v28  ;;  %v609_v36 = vrot.slane %v2001_v28, %v1995_v21 }
  0x85   :  { %v2016_v37 = vsel %vm224_vm5, %v79_v5, %v479_v29  ;;  %v180_v39 = vrot.slane %v166_v30, %v1980_v59  ;;  %v183_v40 = vcombine.low %v130_v27, %v139_v26 }
  0x86   :  { %v616_v41 = vrot.slane %v602_v35, %v1995_v21  ;;  %v514_v42 = vcombine.high %v2016_v37, %v2016_v37  ;;  %v521_v43 = vrot.slane %v2016_v37, %v1995_v21  ;;  %v49_v45 = vpop.permute.xlu1 %48  ;;  %v2025_v46 = vcombine.low %v147_v34, %v146_v33  ;;  %v1334_v34 = vld [vmem:[%s2331_s3 + $0x70] sm:$0xff] }
  0x87   :  { %v617_v47 = vcombine.high %v609_v36, %v609_v36  ;;  %v625_v48 = vrot.slane %v609_v36, %v1995_v21  ;;  %v481_v49 = vpop.permute.xlu0 %480  ;;  %v181_v50 = vcombine.low %v173_v38, %v180_v39  ;;  %v77_v58 = vsel %vm73_vm3, %v1864_v7, %v49_v45  ;;  %v1333_v45 = vld [vmem:[%s2331_s3 + $0x68] sm:$0xff] }
  0x88   :  { %v618_v51 = vcombine.high %v616_v41, %v616_v41  ;;  %v2029_v52 = vrot.slane %v616_v41, %v1995_v21  ;;  %v528_v53 = vrot.slane %v514_v42, %v1995_v21  ;;  %v529_v54 = vcombine.high %v521_v43, %v521_v43 }
  0x89   :  { %v639_v55 = vrot.slane %v617_v47, %v1995_v21  ;;  %v647_v56 = vcombine.high %v625_v48, %v625_v48  ;;  %v2034_v57 = vsel %vm224_vm5, %v80_v2, %v481_v49  ;;  %1695 = vmatprep.mubr.msk.f32.mxu0 %vm224_vm5, %v181_v50  ;;  %v537_v63 = vrot.slane %v521_v43, %v1995_v21 }
  0x8a   :  { %v2040_v60 = vrot.slane %v618_v51, %v1995_v21  ;;  %v648_v61 = vcombine.high %v2029_v52, %v2029_v52  ;;  %v530_v62 = vcombine.high %v528_v53, %v528_v53  ;;  %v2048_v2 = vrot.slane %v528_v53, %v1995_v21  ;;  %v485_v9 = vpop.permute.xlu1 %484 }
  0x8b   :  { %v649_v3 = vcombine.high %v639_v55, %v639_v55  ;;  %v2045_v4 = vcombine.low %v639_v55, %v647_v56  ;;  %v563_v5 = vcombine.high %v2034_v57, %v2034_v57  ;;  %v68_v8 = vpop.permute.xlu0 %67  ;;  %v551_v10 = vrot.slane %v529_v54, %v1995_v21  ;;  %v1332_v54 = vld [vmem:[%s2331_s3 + $0x60] sm:$0xff] }
  0x8c   :  { %v570_v11 = vrot.slane %v2034_v57, %v1995_v21  ;;  %v197_v12 = vrot.slane %v183_v40, %v1980_v59  ;;  %v82_v13 = vsel %vm78_vm4, %v77_v58, %v68_v8  ;;  %v148_v15 = vcombine.high %v146_v33, %v146_v33 }
  0x8d   :  { %v577_v14 = vrot.slane %v563_v5, %v1995_v21  ;;  %v149_v16 = vcombine.high %v82_v13, %v82_v13  ;;  %v156_v17 = vrot.slane %v82_v13, %v1980_v59  ;;  %v2060_v19 = vcombine.low %v649_v3, %v2029_v52 }
  0x8e   :  { %v578_v20 = vcombine.high %v570_v11, %v570_v11  ;;  %v198_v22 = vcombine.low %v190_v32, %v197_v12  ;;  %v2066_v24 = vsel %vm224_vm5, %v82_v13, %v485_v9  ;;  %v585_v29 = vrot.slane %v570_v11, %v1995_v21 }
  0x8f   :  { %v592_v1 = vrot.slane %v577_v14, %v1995_v21  ;;  %v163_v25 = vrot.slane %v149_v16, %v1980_v59  ;;  %v164_v26 = vcombine.high %v156_v17, %v156_v17  ;;  %v200_v27 = vcombine.low %v148_v15, %v156_v17 }
  0x90   :  { %v599_v30 = vrot.slane %v578_v20, %v1995_v21  ;;  %1696 = vmatmul.mubr.msk.f32.vlgmr.msra.gmra.mxu0 %vm224_vm5, %v198_v22  ;;  %v651_v32 = vcombine.high %v2066_v24, %v2066_v24  ;;  %v658_v33 = vrot.slane %v2066_v24, %v1995_v21  ;;  %v650_v39 = vcombine.high %v2040_v60, %v2040_v60 }
  0x91   :  { %v741_v35 = vcombine.low %v592_v1, %v625_v48  ;;  %1362 = vmatpush1.msra.mxu0 %v1335_v23  ;;  %v214_v36 = vrot.slane %v200_v27, %v1980_v59  ;;  %v216_v38 = vcombine.low %v164_v26, %v163_v25  ;;  %v207_v48 = vrot.slane %v2025_v46, %v1980_v59  ;;  %v1329_v1 = vld [vmem:[%s2331_s3 + $0x48] sm:$0xff] }
  0x92   :  { %v739_v40 = vcombine.low %v585_v29, %v599_v30  ;;  %v1611_v41 = vcombine.high %v585_v29, %v599_v30  ;;  %1363 = vmatprep.subr.mxu0 %v1795_v44  ;;  %v665_v42 = vrot.slane %v651_v32, %v1995_v21  ;;  %v666_v43 = vcombine.high %v658_v33, %v658_v33  ;;  %v1328_v30 = vld [vmem:[%s2331_s3 + $0x40] sm:$0xff] }
  0x93   :  { %v673_v47 = vrot.slane %v658_v33, %v1995_v21  ;;  %1364 = vmatpush1.msra.mxu0 %v1334_v34  ;;  %v223_v49 = vrot.slane %v216_v38, %v1980_v59  ;;  %v558_v50 = vrot.slane %v530_v62, %v1995_v21  ;;  %v690_v55 = vcombine.low %v537_v63, %v551_v10  ;;  %v1331_v62 = vld [vmem:[%s2331_s3 + $0x58] sm:$0xff] }
  0x94   :  { %v680_v51 = vrot.slane %v665_v42, %v1995_v21  ;;  %v687_v53 = vrot.slane %v666_v43, %v1995_v21  ;;  %1365 = vmatprep.subr.mxu0 %v1795_v44  ;;  %v1609_v56 = vcombine.high %v537_v63, %v551_v10  ;;  %v215_v46 = vcombine.low %v207_v48, %v214_v36  ;;  %v1327_v38 = vld [vmem:[%s2331_s3 + $0x38] sm:$0xff]  ;;  %v1326_v42 = vld [vmem:[%s2331_s3 + $0x30] sm:$0xff]  ;;  %v1324_v48 = vld [vmem:[%s2331_s3 + $0x20] sm:$0xff] }
  0x95   :  { %v688_v58 = vcombine.high %v673_v47, %v673_v47  ;;  %v790_v3 = vcombine.low %v650_v39, %v673_v47  ;;  %1366 = vmatpush1.msra.mxu0 %v1333_v45  ;;  %v692_v5 = vcombine.low %v2048_v2, %v558_v50  ;;  %v1610_v8 = vcombine.high %v2048_v2, %v558_v50  ;;  %v1330_v2 = vld [vmem:[%s2331_s3 + $0x50] sm:$0xff]  ;;  %v1325_v45 = vld [vmem:[%s2331_s3 + $0x28] sm:$0xff] }
  0x96   :  { %1367 = vmatprep.subr.mxu0 %v1795_v44  ;;  %v700_v9 = vrot.slane %v690_v55, %v1995_v21  ;;  %v707_v11 = vrot.slane %v1609_v56, %v1995_v21  ;;  %v749_v63 = vrot.slane %v739_v40, %v1995_v21  ;;  %1698 = vmatprep.mubr.msk.f32.mxu0 %vm224_vm5, %v215_v46  ;;  %v1322_v50 = vld [vmem:[%s2331_s3 + $0x10] sm:$0xff]  ;;  %v1317_v55 = vrot.slane %v1859_v6, 4  ;;  %v1336_v6 = vld [vmem:[%s2331_s3 + $0x80] sm:$0xff] }
  0x97   :  { %v791_v10 = vcombine.low %v687_v53, %v688_v58  ;;  %1368 = vmatpush1.msra.mxu0 %v1332_v54  ;;  %v714_v12 = vrot.slane %v692_v5, %v1995_v21  ;;  %v756_v13 = vrot.slane %v1611_v41, %v1995_v21  ;;  %v721_v14 = vrot.slane %v1610_v8, %v1995_v21  ;;  %v1339_v54 = vld [vmem:[%s2331_s3 + $0x98] sm:$0xff]  ;;  %v1338_v58 = vld [vmem:[%s2331_s3 + $0x90] sm:$0xff] }
  0x98   :  { %1369 = vmatprep.subr.mxu0 %v1795_v44  ;;  %1699 = vmatmul.mubr.msk.f32.gmra.mxu0 %vm224_vm5, %v223_v49  ;;  %v722_v15 = vcombine.low %v700_v9, %v707_v11  ;;  %v763_v16 = vrot.slane %v741_v35, %v1995_v21  ;;  %v770_v17 = vrot.slane %v2045_v4, %v1995_v21  ;;  %v1323_v49 = vld [vmem:[%s2331_s3 + $0x18] sm:$0xff]  ;;  %v1318_v56 = vrot.slane %v1864_v7, 4 }
  0x99   :  { %1370 = vmatpush1.msra.mxu0 %v1331_v62  ;;  %v771_v20 = vcombine.low %v749_v63, %v756_v13  ;;  %v789_v22 = vcombine.low %v2040_v60, %v648_v61  ;;  %v798_v23 = vrot.slane %v2060_v19, %v1995_v21  ;;  %v723_v25 = vcombine.low %v714_v12, %v721_v14 }
  0x9a   :  { %1371 = vmatprep.subr.mxu0 %v1795_v44  ;;  %v812_v26 = vrot.slane %v790_v3, %v1995_v21  ;;  %v819_v4 = vrot.slane %v791_v10, %v1995_v21  ;;  %v772_v27 = vcombine.low %v763_v16, %v770_v17  ;;  %v689_v61 = vcombine.high %v687_v53, %v687_v53  ;;  %v1320_v53 = vld [vmem:[%s2331_s3] sm:$0xff]  ;;  %v1337_v3 = vld [vmem:[%s2331_s3 + $0x88] sm:$0xff] }
  0x9b   :  { %1372 = vmatpush1.msra.mxu0 %v1330_v2  ;;  %v779_v52 = vrot.slane %v771_v20, %v1995_v21  ;;  %v805_v60 = vrot.slane %v789_v22, %v1995_v21  ;;  %v730_v19 = vrot.slane %v722_v15, %v1995_v21  ;;  %v737_v29 = vrot.slane %v723_v25, %v1995_v21 }
  0x9c   :  { %1373 = vmatprep.subr.mxu0 %v1795_v44  ;;  %v821_v32 = vcombine.low %v812_v26, %v819_v4  ;;  %1619 = vmatprep.mubr.msk.f32.mxu0 %vm73_vm3, %v2006_v31  ;;  %v786_v33 = vrot.slane %v772_v27, %v1995_v21  ;;  %v837_v35 = vcombine.low %v689_v61, %v680_v51  ;;  %v1321_v51 = vld [vmem:[%s2331_s3 + $0x8] sm:$0xff] }
  0x9d   :  { %1374 = vmatpush1.msra.mxu0 %v1329_v1  ;;  %v820_v34 = vcombine.low %v798_v23, %v805_v60  ;;  %v738_v36 = vcombine.low %v730_v19, %v737_v29  ;;  %v1319_v46 = vsel %vm1313_vm6, %v1317_v55, %v1318_v56  ;;  %v1345_v5 = vcombine.low %v2066_v24, %v1318_v56 }
  0x9e   :  { %1375 = vmatprep.subr.mxu0 %v1795_v44  ;;  %v835_v39 = vrot.slane %v821_v32, %v1995_v21  ;;  %v787_v40 = vcombine.low %v779_v52, %v786_v33  ;;  %v844_v31 = vrot.slane %v837_v35, %v1995_v21  ;;  %v1616_v7 = vcombine.low %v1315_v18, %v1319_v46  ;;  %v1508_v18 = vld [vmem:[%s2333_s5 + $0x40] sm:$0xff] }
  0x9f   :  { %1376 = vmatpush1.msra.mxu0 %v1328_v30  ;;  %v828_v41 = vrot.slane %v820_v34, %v1995_v21  ;;  %1733 = vmatprep.mubr.f32.mxu1 %v738_v36  ;;  %v1615_v62 = vcombine.low %v2034_v57, %v2001_v28  ;;  %v1618_v8 = vcombine.high %v1319_v46, %v1345_v5 }
  0xa0   :  { %1377 = vmatprep.subr.mxu0 %v1795_v44  ;;  %1734 = vmatmul.mubr.f32.vlgmr.msra.gmra.mxu1 %v787_v40  ;;  %v851_v47 = vrot.slane %v844_v31, %v1995_v21  ;;  %v1344_v9 = vcombine.high %v2001_v28, %v1319_v46  ;;  %v1506_v28 = vld [vmem:[%s2333_s5 + $0x30] sm:$0xff] }
  0xa1   :  { %1378 = vmatpush1.msra.mxu0 %v1327_v38  ;;  %v836_v43 = vcombine.low %v828_v41, %v835_v39  ;;  %1740 = vmatpush3.msra.mxu1 %v1508_v18 }
  0xa2   :  { %1379 = vmatprep.subr.mxu0 %v1795_v44  ;;  %v1617_v0 = vcombine.low %v1344_v9, %v2066_v24  ;;  %1741 = vmatprep.subr.mxu1 %v1795_v44 }
  0xa3   :  { %1380 = vmatpush1.msra.mxu0 %v1326_v42  ;;  %1736 = vmatprep.mubr.f32.mxu1 %v836_v43 }
  0xa4   :  { %1381 = vmatprep.subr.mxu0 %v1795_v44  ;;  %1737 = vmatmul.mubr.f32.gmra.mxu1 %v851_v47 }
  0xa5   :  { %1382 = vmatpush1.msra.mxu0 %v1325_v45  ;;  %1757 = vmatprep.mubr.msk.f32.mxu1 %vm1798_vm12, %v1795_v44 }
  0xa6   :  { %1383 = vmatprep.subr.mxu0 %v1795_v44 }
  0xa7   :  { %1384 = vmatpush1.msra.mxu0 %v1324_v48 }
  0xa8   :  { %1385 = vmatprep.subr.mxu0 %v1795_v44 }
  0xa9   :  { %1386 = vmatpush1.msra.mxu0 %v1323_v49 }
  0xaa   :  { %1387 = vmatprep.subr.mxu0 %v1795_v44 }
  0xab   :  { %1388 = vmatpush1.msra.mxu0 %v1322_v50 }
  0xac   :  { %1389 = vmatprep.subr.mxu0 %v1795_v44 }
  0xad   :  { %1390 = vmatpush1.msra.mxu0 %v1321_v51 }
  0xae   :  { %1391 = vmatprep.subr.mxu0 %v1795_v44 }
  0xaf   :  { %1392 = vmatpush1.msra.mxu0 %v1320_v53 }
  0xb0   :  { %1417 = vmatprep.subr.mxu0 %v1795_v44 }
  0xb1   :  { %1418 = vmatpush2.msra.mxu0 %v1339_v54 }
  0xb2   :  { %1419 = vmatprep.subr.mxu0 %v1795_v44 }
  0xb3   :  { %1420 = vmatpush2.msra.mxu0 %v1338_v58 }
  0xb4   :  { %1421 = vmatprep.subr.mxu0 %v1795_v44 }
  0xb5   :  { %1422 = vmatpush2.msra.mxu0 %v1337_v3 }
  0xb6   :  { %1423 = vmatprep.subr.mxu0 %v1795_v44 }
  0xb7   :  { %1424 = vmatpush2.msra.mxu0 %v1336_v6 }
  0xb8   :  { %1426 = vmatmul.mubr.f32.vlgmr.msra.gmra.mxu0 %v2016_v37  ;;  %v1507_v37 = vld [vmem:[%s2333_s5 + $0x38] sm:$0xff] }
  0xb9   :  { %1620 = vmatprep.mubr.msk.f32.mxu0 %vm73_vm3, %v1616_v7  ;;  %1742 = vmatpush3.msra.mxu1 %v1507_v37 }
  0xba   :  { %1743 = vmatprep.subr.mxu1 %v1795_v44 }
  0xbb   :  { %1744 = vmatpush3.msra.mxu1 %v1506_v28 }
  0xbc   :  { %1431 = vmatmul.mubr.f32.gmra.mxu0 %v1615_v62  ;;  %1745 = vmatprep.subr.mxu1 %v1795_v44 }
  0xbd   :  { %1621 = vmatprep.mubr.msk.f32.mxu0 %vm73_vm3, %v1618_v8 }
  0xc0   :  { %1436 = vmatmul.mubr.f32.gmra.mxu0 %v1617_v0 }
 0x150   :  { %v1697_v57 = vpop.f32.mrf.mxu0 }
 0x151   :  { %v339_v24 = vcombine.high %v1697_v57, %v1697_v57  ;;  %v346_v11 = vrot.slane %v1697_v57, %v1980_v59 }
 0x152   :  { %v299_v63 = vpop.f32.mrf.mxu0 }
 0x153   :  { %v354_v10 = vcombine.high %v346_v11, %v346_v11  ;;  %v322_v12 = vcombine.high %v299_v63, %v299_v63  ;;  %v329_v13 = vrot.slane %v299_v63, %v1980_v59  ;;  %v353_v2 = vrot.slane %v339_v24, %v1980_v59 }
 0x155   :  { %v398_v14 = vcombine.low %v346_v11, %v354_v10  ;;  %v336_v15 = vrot.slane %v322_v12, %v1980_v59  ;;  %v337_v16 = vcombine.high %v329_v13, %v329_v13  ;;  %v412_v23 = vrot.slane %v353_v2, %v1980_v59 }
 0x156   :  { %v355_v19 = vcombine.high %v353_v2, %v353_v2 }
 0x157   :  { %v405_v17 = vrot.slane %v398_v14, %v1980_v59  ;;  %v338_v20 = vcombine.high %v336_v15, %v336_v15  ;;  %v381_v22 = vcombine.low %v329_v13, %v337_v16 }
 0x158   :  { %v1700_v1 = vpop.f32.mrf.mxu0 }
 0x159   :  { %v382_v25 = vcombine.low %v336_v15, %v338_v20  ;;  %v413_v26 = vcombine.low %v405_v17, %v412_v23  ;;  %v389_v27 = vrot.slane %v381_v22, %v1980_v59  ;;  %v379_v60 = vrot.slane %v1700_v1, %v1980_v59 }
 0x15a   :  { %v309_v4 = vpop.f32.mrf.mxu0 }
 0x15b   :  { %v396_v52 = vrot.slane %v382_v25, %v1980_v59  ;;  %v356_v61 = vcombine.high %v309_v4, %v309_v4  ;;  %v363_v29 = vrot.slane %v309_v4, %v1980_v59  ;;  %v454_v35 = vsel %vm453_vm7, %v413_v26, -inf }
 0x15c   :  { %v380_v38 = vcombine.high %v379_v60, %v379_v60 }
 0x15d   :  { %v397_v30 = vcombine.low %v389_v27, %v396_v52  ;;  %v370_v32 = vrot.slane %v356_v61, %v1980_v59  ;;  %v371_v33 = vcombine.high %v363_v29, %v363_v29  ;;  %v414_v34 = vcombine.low %v355_v19, %v363_v29 }
 0x15e   :  { %v445_v49 = vrot.slane %v380_v38, %v1980_v59 }
 0x15f   :  { %v452_v36 = vsel %vm451_vm8, %v397_v30, -inf  ;;  %v372_v39 = vcombine.high %v370_v32, %v370_v32  ;;  %v415_v41 = vcombine.low %v371_v33, %v370_v32  ;;  %v422_v43 = vrot.slane %v414_v34, %v1980_v59 }
 0x160   :  { %v455_v40 = vmax.f32 %v452_v36, %v454_v35  ;;  %v1735_v42 = vpop.f32.mrf.mxu1 }
 0x161   :  { %v431_v31 = vcombine.low %v372_v39, %v379_v60  ;;  %v429_v45 = vrot.slane %v415_v41, %v1980_v59  ;;  %v994_v47 = vcombine.high %v1735_v42, %v1735_v42  ;;  %v1001_v48 = vrot.slane %v1735_v42, %v1995_v21 }
 0x162   :  { %v922_v51 = vpop.f32.mrf.mxu1  ;;  %v456_v53 = vrot.slane %v455_v40, 4 }
 0x163   :  { %v438_v50 = vrot.slane %v431_v31, %v1980_v59  ;;  %v430_v54 = vcombine.low %v422_v43, %v429_v45  ;;  %v1008_v55 = vrot.slane %v994_v47, %v1995_v21  ;;  %v1009_v56 = vcombine.high %v1001_v48, %v1001_v48 }
 0x164   :  { %v945_v3 = vcombine.high %v922_v51, %v922_v51  ;;  %v952_v46 = vrot.slane %v922_v51, %v1995_v21  ;;  %v1738_v6 = vpop.f32.mrf.mxu1  ;;  %v1017_v5 = vrot.slane %v1001_v48, %v1995_v21  ;;  %v457_v57 = vmax.f32 %v455_v40, %v456_v53 }
 0x165   :  { %v446_v58 = vcombine.low %v438_v50, %v445_v49  ;;  %v1010_v7 = vcombine.high %v1008_v55, %v1008_v55  ;;  %v1024_v62 = vrot.slane %v1008_v55, %v1995_v21  ;;  %v1031_v8 = vrot.slane %v1009_v56, %v1995_v21 }
 0x166   :  { %v462_v59 = vsel %vm451_vm8, %v430_v54, -inf  ;;  %v959_v0 = vrot.slane %v945_v3, %v1995_v21  ;;  %v960_v18 = vcombine.high %v952_v46, %v952_v46  ;;  %v968_v10 = vrot.slane %v952_v46, %v1995_v21  ;;  %v932_v12 = vpop.f32.mrf.mxu1 }
 0x167   :  { %v463_v9 = vsel %vm453_vm7, %v446_v58, -inf  ;;  %v1163_v28 = vcombine.low %v1017_v5, %v1031_v8  ;;  %v1038_v24 = vrot.slane %v1010_v7, %v1995_v21  ;;  %v1614_v11 = vcombine.high %v1017_v5, %v1031_v8 }
 0x168   :  { %v464_v37 = vmax.f32 %v462_v59, %v463_v9  ;;  %v961_v63 = vcombine.high %v959_v0, %v959_v0  ;;  %v1040_v13 = vcombine.high %v1024_v62, %v1024_v62  ;;  %v1185_v14 = vrot.slane %v1024_v62, %v1995_v21 }
 0x169   :  { %v1171_v2 = vrot.slane %v1163_v28, %v1995_v21  ;;  %v982_v15 = vrot.slane %v960_v18, %v1995_v21  ;;  %v1178_v16 = vrot.slane %v1614_v11, %v1995_v21  ;;  %v975_v17 = vrot.slane %v959_v0, %v1995_v21 }
 0x16a   :  { %v989_v20 = vrot.slane %v961_v63, %v1995_v21  ;;  %v1098_v22 = vrot.slane %v1738_v6, %v1995_v21  ;;  %v465_v23 = vrot.slane %v464_v37, 4  ;;  %v1043_v26 = vcombine.high %v932_v12, %v932_v12 }
 0x16b   :  { %v1114_v1 = vcombine.low %v968_v10, %v982_v15  ;;  %v1612_v25 = vcombine.high %v968_v10, %v982_v15  ;;  %v1186_v4 = vcombine.low %v1171_v2, %v1178_v16  ;;  %v1202_v61 = vcombine.low %v1038_v24, %v1040_v13 }
 0x16c   :  { %v1116_v27 = vcombine.low %v975_v17, %v989_v20  ;;  %v1613_v52 = vcombine.high %v975_v17, %v989_v20  ;;  %v1099_v60 = vcombine.high %v1098_v22, %v1098_v22  ;;  %v1050_v30 = vrot.slane %v932_v12, %v1995_v21 }
 0x16d   :  { %v1124_v19 = vrot.slane %v1114_v1, %v1995_v21  ;;  %v1131_v29 = vrot.slane %v1612_v25, %v1995_v21  ;;  %v1193_v32 = vrot.slane %v1186_v4, %v1995_v21  ;;  %v1200_v33 = vrot.slane %v1185_v14, %v1995_v21 }
 0x16e   :  { %v1138_v34 = vrot.slane %v1116_v27, %v1995_v21  ;;  %v1145_v35 = vrot.slane %v1613_v52, %v1995_v21  ;;  %v1057_v38 = vrot.slane %v1043_v26, %v1995_v21  ;;  %v1058_v39 = vcombine.high %v1050_v30, %v1050_v30 }
 0x16f   :  { %v1146_v36 = vcombine.low %v1124_v19, %v1131_v29  ;;  %v1066_v40 = vrot.slane %v1050_v30, %v1995_v21  ;;  %v1106_v31 = vrot.slane %v1098_v22, %v1995_v21  ;;  %v1113_v42 = vrot.slane %v1099_v60, %v1995_v21 }
 0x170   :  { %v1147_v41 = vcombine.low %v1138_v34, %v1145_v35  ;;  %v1042_v43 = vcombine.high %v1038_v24, %v1038_v24  ;;  %v1201_v45 = vcombine.low %v1193_v32, %v1200_v33  ;;  %v1059_v47 = vcombine.high %v1057_v38, %v1057_v38 }
 0x171   :  { %v1073_v48 = vrot.slane %v1057_v38, %v1995_v21  ;;  %v1080_v49 = vrot.slane %v1058_v39, %v1995_v21  ;;  %v1154_v50 = vrot.slane %v1146_v36, %v1995_v21  ;;  %v1088_v53 = vcombine.high %v1066_v40, %v1066_v40 }
 0x172   :  { %v1161_v51 = vrot.slane %v1147_v41, %v1995_v21  ;;  %v1203_v54 = vcombine.low %v1042_v43, %v1066_v40  ;;  %v1087_v55 = vrot.slane %v1059_v47, %v1995_v21  ;;  %v1212_v3 = vrot.slane %v1202_v61, %v1995_v21 }
 0x173   :  { %v1089_v56 = vcombine.high %v1073_v48, %v1073_v48  ;;  %v1090_v58 = vcombine.high %v1080_v49, %v1080_v49  ;;  %v1204_v6 = vcombine.low %v1080_v49, %v1088_v53  ;;  %v458_v5 = vrot.slane %v457_v57, 2 }
 0x174   :  { %v1162_v46 = vcombine.low %v1154_v50, %v1161_v51  ;;  %v1219_v7 = vrot.slane %v1203_v54, %v1995_v21  ;;  %v1091_v62 = vcombine.high %v1087_v55, %v1087_v55  ;;  %v466_v9 = vmax.f32 %v464_v37, %v465_v23 }
 0x175   :  { %v1205_v8 = vcombine.low %v1090_v58, %v1073_v48  ;;  %v1251_v59 = vcombine.low %v1087_v55, %v1089_v56  ;;  %v1226_v0 = vrot.slane %v1204_v6, %v1995_v21  ;;  %v1296_v28 = vsel %vm1295_vm9, %v1201_v45, -inf  ;;  %v1505_v58 = vld [vmem:[%s2333_s5 + $0x28] sm:$0xff] }
 0x176   :  { %v1294_v18 = vsel %vm451_vm8, %v1162_v46, -inf  ;;  %v459_v24 = vmax.f32 %v457_v57, %v458_v5  ;;  %v1234_v63 = vcombine.low %v1212_v3, %v1219_v7  ;;  %v1252_v10 = vcombine.low %v1091_v62, %v1106_v31  ;;  %v1504_v3 = vld [vmem:[%s2333_s5 + $0x20] sm:$0xff]  ;;  %1746 = vmatpush3.msra.mxu1 %v1505_v58  ;;  %v1503_v5 = vld [vmem:[%s2333_s5 + $0x18] sm:$0xff] }
 0x177   :  { %v1233_v11 = vrot.slane %v1205_v8, %v1995_v21  ;;  %v1297_v13 = vmax.f32 %v1294_v18, %v1296_v28  ;;  %v467_v14 = vrot.slane %v466_v9, 2  ;;  %v1273_v15 = vrot.slane %v1113_v42, %v1995_v21  ;;  %1747 = vmatprep.subr.mxu1 %v1795_v44 }
 0x178   :  { %v1427_v12 = vpop.f32.mrf.mxu0  ;;  %v1259_v37 = vrot.slane %v1251_v59, %v1995_v21  ;;  %v1266_v17 = vrot.slane %v1252_v10, %v1995_v21  ;;  %v460_v57 = vrot.slane %v459_v24, 1  ;;  %v1242_v25 = vrot.slane %v1234_v63, %v1995_v21  ;;  %1748 = vmatpush3.msra.mxu1 %v1504_v3 }
 0x179   :  { %v1444_v2 = vcombine.high %v1427_v12, %v1427_v12  ;;  %v1235_v16 = vcombine.low %v1226_v0, %v1233_v11  ;;  %v1298_v23 = vrot.slane %v1297_v13, 4  ;;  %v468_v1 = vmax.f32 %v466_v9, %v467_v14  ;;  %1749 = vmatprep.subr.mxu1 %v1795_v44  ;;  %v1502_v9 = vld [vmem:[%s2333_s5 + $0x10] sm:$0xff] }
 0x17a   :  { %v1429_v20 = vpop.f32.mrf.mxu0  ;;  %v1274_v4 = vcombine.low %v1259_v37, %v1266_v17  ;;  %v1288_v19 = vrot.slane %v1273_v15, %v1995_v21  ;;  %v461_v36 = vmax.f32 %v459_v24, %v460_v57  ;;  %1750 = vmatpush3.msra.mxu1 %v1503_v5  ;;  %v1501_v24 = vld [vmem:[%s2333_s5 + $0x8] sm:$0xff] }
 0x17b   :  { %v1448_v22 = vcombine.low %v1427_v12, %v1444_v2  ;;  %v1249_v26 = vrot.slane %v1235_v16, %v1995_v21  ;;  %v469_v61 = vrot.slane %v468_v1, 1  ;;  %v1299_v35 = vmax.f32 %v1297_v13, %v1298_v23  ;;  %1751 = vmatprep.subr.mxu1 %v1795_v44  ;;  %v1500_v12 = vld [vmem:[%s2333_s5] sm:$0xff] }
 0x17c   :  { %v1432_v27 = vpop.f32.mrf.mxu0  ;;  %v1281_v30 = vrot.slane %v1274_v4, %v1995_v21  ;;  %1752 = vmatpush3.msra.mxu1 %v1502_v9 }
 0x17d   :  { %v1452_v52 = vsel %vm451_vm8, %v1448_v22, -inf  ;;  %v1454_v60 = vsel %vm1453_vm10, %v1432_v27, -inf  ;;  %v1250_v29 = vcombine.low %v1242_v25, %v1249_v26  ;;  %v1445_v34 = vcombine.high %v1432_v27, %v1432_v27  ;;  %1753 = vmatprep.subr.mxu1 %v1795_v44  ;;  %v1622_v22 = vld [vmem:[%s2332_s4] ss:$0 sm:$0xff]  ;;  %s1770_s4 = scalar_lea.vmem %s1598_s29, 32 }
 0x17e   :  { %v1455_v32 = vmax.f32 %v1452_v52, %v1454_v60  ;;  %v1434_v33 = vpop.f32.mrf.mxu0  ;;  %v470_v38 = vmax.f32 %v468_v1, %v469_v61  ;;  %v1289_v41 = vcombine.low %v1281_v30, %v1288_v19  ;;  %v1300_v51 = vrot.slane %v1299_v35, 2  ;;  %1754 = vmatpush3.msra.mxu1 %v1501_v24  ;;  %v1623_v26 = vld [vmem:[%s2334_s6] ss:$0 sm:$0xff]  ;;  %p1771_p0 = scmp.ne.s32.totalorder %s1598_s29, %s1770_s4  ;;  %p1776_p2 = scmp.lt.s32.totalorder %s1770_s4, %s1770_s4 }
 0x17f   :  { %v1304_v48 = vsel %vm451_vm8, %v1250_v29, -inf  ;;  %1755 = vmatprep.subr.mxu1 %v1795_v44 }
 0x180   :  { %v1456_v39 = vrot.slane %v1455_v32, 4  ;;  %v1437_v40 = vpop.f32.mrf.mxu0  ;;  %v1474_v43 = vsel %vm1473_vm11, %v470_v38, %v461_v36  ;;  %v1305_v49 = vsel %vm1295_vm9, %v1289_v41, -inf  ;;  %v1301_v6 = vmax.f32 %v1299_v35, %v1300_v51  ;;  %1756 = vmatpush3.msra.mxu1 %v1500_v12  ;;  %p1777_p3 = por %p1776_p2, %p1775_p1 }
 0x181   :  { %v1446_v31 = vcombine.high %v1437_v40, %v1437_v40  ;;  %v1449_v42 = vcombine.low %v1445_v34, %v1437_v40  ;;  %v1306_v53 = vmax.f32 %v1304_v48, %v1305_v49 }
 0x182   :  { %v1457_v45 = vmax.f32 %v1455_v32, %v1456_v39  ;;  %v1439_v47 = vpop.f32.mrf.mxu0  ;;  %v1302_v18 = vrot.slane %v1301_v6, 1  ;;  %p1778_p4 = pnand %p1777_p3, %p1771_p0 }
 0x183   :  { %v1462_v21 = vsel %vm451_vm8, %v1449_v42, -inf  ;;  %v1463_v50 = vsel %vm1453_vm10, %v1446_v31, -inf  ;;  %v1307_v56 = vrot.slane %v1306_v53, 4 }
 0x184   :  { %v1458_v54 = vrot.slane %v1457_v45, 2  ;;  %v1464_v55 = vmax.f32 %v1462_v21, %v1463_v50  ;;  %v1303_v2 = vmax.f32 %v1301_v6, %v1302_v18 }
 0x185   :  { %v1308_v7 = vmax.f32 %v1306_v53, %v1307_v56 }
 0x186   :  { %v1465_v46 = vrot.slane %v1464_v55, 4  ;;  %v1459_v62 = vmax.f32 %v1457_v45, %v1458_v54 }
 0x187   :  { %v1309_v59 = vrot.slane %v1308_v7, 2 }
 0x188   :  { %v1466_v8 = vmax.f32 %v1464_v55, %v1465_v46  ;;  %v1460_v11 = vrot.slane %v1459_v62, 1 }
 0x189   :  { %v1310_v28 = vmax.f32 %v1308_v7, %v1309_v59 }
 0x18a   :  { %v1467_v0 = vrot.slane %v1466_v8, 2  ;;  %v1461_v15 = vmax.f32 %v1459_v62, %v1460_v11 }
 0x18b   :  { %v1311_v10 = vrot.slane %v1310_v28, 1 }
 0x18c   :  { %v1468_v63 = vmax.f32 %v1466_v8, %v1467_v0 }
 0x18d   :  { %v1312_v14 = vmax.f32 %v1310_v28, %v1311_v10 }
 0x18e   :  { %v1469_v13 = vrot.slane %v1468_v63, 1 }
 0x18f   :  { %v1478_v37 = vsel %vm1473_vm11, %v1312_v14, %v1303_v2 }
 0x190   :  { %v1470_v16 = vmax.f32 %v1468_v63, %v1469_v13  ;;  %1479 = vrot.lane.b32.xlu0 %v1478_v37, %s1799_s23 }
 0x192   :  { %v1484_v17 = vsel %vm1473_vm11, %v1470_v16, %v1461_v15 }
 0x193   :  { %1485 = vrot.lane.b32.xlu1 %v1484_v17, %s1800_s24 }
 0x202   :  { %v1480_v20 = vpop.permute.xlu0 %1479 }
 0x203   :  { %v1488_v23 = vsel %vm451_vm8, %v1474_v43, %v1480_v20 }
 0x205   :  { %v1486_v44 = vpop.permute.xlu1 %1485 }
 0x206   :  { %v1490_v57 = vsel %vm1489_vm13, %v1488_v23, %v1486_v44 }
 0x207   :  { %v1498_v1 = vadd.f32 %v1622_v22, %v1490_v57 }
 0x209   :  { %v1499_v25 = vmax.f32 %v1498_v1, 0.0 }
 0x20b   :  { %1758 = vmatmul.mubr.msk.f32.vlgmr.msra.gmra.mxu1 %vm1516_vm14, %v1499_v25 }
 0x2cb   :  { %v1586_v4 = vpop.f32.mrf.mxu1 }
 0x2cc   :  { %v1587_v27 = vadd.f32 %v1623_v26, %v1586_v4 }
 0x2cd   :  { %v1759_v52 = vpop.f32.mrf.mxu1 }
 0x2ce   :  { %1590 = vst [vmem:[#allocation2] sm:$0x3] %v1587_v27 }
 0x2cf   :  { %1781 = shalt.err (!%p1778_p4)
}
 0x2d0   :  { %1600 = dma.vmem_to_hbm [thread:$0]  %s1598_s29, 32, %s2335_s7, [#allocation3]  }
 0x2d1   :  { %1790 = dma.done.wait [#allocation3], 32  }
 0x2d2   :  { %1791 = vsyncadd [#allocation3], 4294967264 }
 0x2d3   :  { %1604 = vsyncpa [#allocation3], 1 }

</bundles_post_ra>
